<compile_context>
chip_gen: v6e
topology: v6e:2x2x1
jax: 0.10.0
libtpu: 0.0.40
codegen_flags: <defaults>
</compile_context>

<pallas_src>
import functools

import jax
import jax.numpy as jnp
from jax.experimental import pallas as pl
from jax.experimental.pallas import tpu as pltpu


def _conv1x1_kernel(b_ref, w_ref, x_ref, o_ref, *, precision):
    # b_ref: (1,)   f32 bias in SMEM
    # w_ref: (1, C) weights in VMEM (input dtype)
    # x_ref: (C, TM) input tile in VMEM
    # o_ref: (1, TM) output tile in VMEM
    acc = jnp.dot(w_ref[...], x_ref[...],
                  preferred_element_type=jnp.float32,
                  precision=precision)                 # MXU, f32 accumulate
    o_ref[...] = (acc + b_ref[0]).astype(o_ref.dtype)  # VPU bias add + cast


def _round_up(x, m):
    return (x + m - 1) // m * m


def _choose_tile(C, HW, in_itemsize, out_itemsize):
    """Pick the spatial tile width TM (multiple of 128)."""
    hw128 = _round_up(HW, 128)
    # Per-step VMEM working set: double-buffered (C, TM) input
    # + double-buffered (1, TM) output.  ~24 MiB target stays safely under the
    # 48 MiB vmem_limit requested below on all of v5e / v6e / v7x while giving
    # MiB-scale DMAs per grid step (per-step pipeline overhead ~0.35 us).
    budget = 24 * 1024 * 1024
    per_lane = 2 * C * in_itemsize + 2 * out_itemsize
    tm = min(hw128, max(1, budget // per_lane))
    # The 128 floor can only exceed the vmem limit for absurd C (> ~45k chans).
    tm = max(128, (tm // 128) * 128)
    return tm, hw128


def fully_conv_layer(x, weight, bias):
    """1x1 Conv2d (C -> 1).  x: (N, C, H, W); weight: (1, C, 1, 1); bias: (1,)."""
    N, C, H, W = x.shape
    HW = H * W
    itemsize = jnp.dtype(x.dtype).itemsize

    tm, hw128 = _choose_tile(C, HW, itemsize, itemsize)

    # Keep >= 2 grid steps when possible so both v7x TensorCores get work.
    n_tiles = pl.cdiv(HW, tm)
    if N * n_tiles < 2 and hw128 > 128:
        tm = _round_up((hw128 + 1) // 2, 128)
        n_tiles = pl.cdiv(HW, tm)

    # NCHW is channel-major per batch element -> free view, no copy, no pad.
    x_flat = x.reshape(N, C, HW)

    w2d = weight.reshape(1, C).astype(x.dtype)
    b_vec = bias.reshape(1).astype(jnp.float32)

    # f32 inputs need full-precision MXU passes (DEFAULT rounds to bf16);
    # bf16/fp8 inputs use the native fast path.  Either way the kernel is
    # HBM-bandwidth bound, so the extra passes are hidden under the DMA.
    precision = (jax.lax.Precision.HIGHEST
                 if x.dtype == jnp.float32 else jax.lax.Precision.DEFAULT)

    out_flat = pl.pallas_call(
        functools.partial(_conv1x1_kernel, precision=precision),
        out_shape=jax.ShapeDtypeStruct((N, 1, HW), x.dtype),
        grid_spec=pltpu.PrefetchScalarGridSpec(
            num_scalar_prefetch=0,
            grid=(N, n_tiles),
            in_specs=[
                pl.BlockSpec(memory_space=pltpu.MemorySpace.SMEM),     # bias (1,)
                pl.BlockSpec((1, C), lambda n, m: (0, 0)),             # weight (1, C)
                pl.BlockSpec((None, C, tm), lambda n, m: (n, 0, m)),   # x tile (C, TM)
            ],
            out_specs=pl.BlockSpec((None, 1, tm), lambda n, m: (n, 0, m)),
        ),
        compiler_params=pltpu.CompilerParams(
            dimension_semantics=("parallel", "parallel"),
            vmem_limit_bytes=48 * 1024 * 1024),
    )(b_vec, w2d, x_flat)

    # Free reshape back to NCHW with a single output channel.
    return out_flat.reshape(N, 1, H, W)


if __name__ == "__main__":
    key = jax.random.PRNGKey(0)
    k_x, k_w, k_b = jax.random.split(key, 3)

    N, C, H, W = 2, 4, 16, 16
    x = jax.random.normal(k_x, (N, C, H, W), dtype=jnp.float32)

    # Conv2d(C, 1, 1) parameter shapes: weight (1, C, 1, 1), bias (1,)
    fan_in = C * 1 * 1
    bound = 1.0 / (fan_in ** 0.5)
    weight = jax.random.uniform(k_w, (1, C, 1, 1), jnp.float32, -bound, bound)
    bias = jax.random.uniform(k_b, (1,), jnp.float32, -bound, bound)

    out = jax.block_until_ready(fully_conv_layer(x, weight, bias))
    assert out.shape == (N, 1, H, W), out.shape

    # Reference: exact f32 broadcast-multiply + channel sum + bias.
    ref = (x * weight.reshape(1, C, 1, 1)).sum(axis=1, keepdims=True) + bias[0]
    assert jnp.allclose(out, ref, atol=1e-5, rtol=1e-5), \
        float(jnp.abs(out - ref).max())

    print("KERNEL_OK")
</pallas_src>

<mosaic_0001>
module attributes {stable_mosaic.version = 11 : i64} {
  func.func @_conv1x1_kernel(%arg0: i32, %arg1: i32, %arg2: memref<1xf32, #tpu.memory_space<smem>>, %arg3: memref<1x4xf32, #tpu.memory_space<vmem>>, %arg4: memref<1x4x256xf32, #tpu.memory_space<vmem>>, %arg5: memref<1x1x256xf32, #tpu.memory_space<vmem>>) attributes {dimension_semantics = [#tpu.dimension_semantics<parallel>, #tpu.dimension_semantics<parallel>], iteration_bounds = array<i64: 2, 1>, scalar_prefetch = 0 : i64, scratch_operands = 0 : i64, tpu.core_type = #tpu.core_type<tc>, window_params = [{transform_indices = @transform_0, window_bounds = array<i64: 1>}, {pipeline_mode = #tpu.pipeline_mode<synchronous>, transform_indices = @transform_1, window_bounds = array<i64: 1, 4>}, {transform_indices = @transform_2, window_bounds = array<i64: 1, 4, 256>}, {transform_indices = @transform_3, window_bounds = array<i64: 1, 1, 256>}]} {
    %c0 = arith.constant 0 : index
    %c0_0 = arith.constant 0 : index
    %0 = vector.load %arg3[%c0, %c0_0] : memref<1x4xf32, #tpu.memory_space<vmem>>, vector<1x4xf32>
    %c0_1 = arith.constant 0 : index
    %c0_2 = arith.constant 0 : index
    %c0_3 = arith.constant 0 : index
    %1 = vector.load %arg4[%c0_1, %c0_2, %c0_3] : memref<1x4x256xf32, #tpu.memory_space<vmem>>, vector<1x4x256xf32>
    %2 = vector.shape_cast %1 : vector<1x4x256xf32> to vector<4x256xf32>
    %cst = arith.constant dense<0.000000e+00> : vector<1x256xf32>
    %3 = tpu.matmul %0, %2, %cst {dimension_numbers = #tpu.dot_dimension_numbers<[1], [0], [0], [1], [0, 0, 1, 1], [], []>, precision = #tpu.contract_precision<fp32>} : vector<1x4xf32>, vector<4x256xf32>, vector<1x256xf32> -> vector<1x256xf32>
    %c0_4 = arith.constant 0 : index
    %4 = memref.load %arg2[%c0_4] : memref<1xf32, #tpu.memory_space<smem>>
    %5 = vector.broadcast %4 : f32 to vector<1x256xf32>
    %6 = arith.addf %3, %5 : vector<1x256xf32>
    %c0_5 = arith.constant 0 : index
    %c0_6 = arith.constant 0 : index
    %c0_7 = arith.constant 0 : index
    %7 = vector.load %arg5[%c0_5, %c0_6, %c0_7] : memref<1x1x256xf32, #tpu.memory_space<vmem>>, vector<1x1x256xf32>
    %8 = vector.shape_cast %7 : vector<1x1x256xf32> to vector<1x256xf32>
    %9 = vector.shape_cast %6 : vector<1x256xf32> to vector<1x1x256xf32>
    tpu.vector_store %arg5[%c0_5, %c0_6, %c0_7], %9 {strides = array<i32>} : memref<1x1x256xf32, #tpu.memory_space<vmem>>, vector<1x1x256xf32>,
    return
  }
  func.func @transform_0(%arg0: i32, %arg1: i32) -> i32 {
    %c0_i32 = arith.constant 0 : i32
    %c0_i32_0 = arith.constant 0 : i32
    return %c0_i32 : i32
  }
  func.func @transform_1(%arg0: i32, %arg1: i32) -> (i32, i32) {
    %c0_i32 = arith.constant 0 : i32
    %c0_i32_0 = arith.constant 0 : i32
    %c0_i32_1 = arith.constant 0 : i32
    return %c0_i32, %c0_i32_0 : i32, i32
  }
  func.func @transform_2(%arg0: i32, %arg1: i32) -> (i32, i32, i32) {
    %c0_i32 = arith.constant 0 : i32
    %c0_i32_0 = arith.constant 0 : i32
    return %arg0, %c0_i32, %arg1 : i32, i32, i32
  }
  func.func @transform_3(%arg0: i32, %arg1: i32) -> (i32, i32, i32) {
    %c0_i32 = arith.constant 0 : i32
    %c0_i32_0 = arith.constant 0 : i32
    return %arg0, %c0_i32, %arg1 : i32, i32, i32
  }
}

</mosaic_0001>

<bundles_post_ra>
// kernel: tpu_custom_call.1
= control target key start
LH: loop header
LB: loop body
LE: loop exit
PB: predicated region body
PF: predicated region fallthrough
CT: control target
= control target key end

     0   :  { %s1169_s0 = inlined_call_operand.<no memory space> [shape: f32[1], index: 0, kind: input, shape index: {}]   ;;  %s1170_s1 = inlined_call_operand.vmem [shape: f32[1,4], index: 1, kind: input, shape index: {}]   ;;  %s1171_s2 = inlined_call_operand.hbm [shape: f32[2,4,256], index: 2, kind: input, shape index: {}]   ;;  %s1172_s3 = inlined_call_operand.hbm [shape: f32[2,1,256], index: 3, kind: output, shape index: {}]  }
   0x1   :  { %8 = sst [smem:[#allocation2]] %s1169_s0 }
   0x2   :  { %9 = vsyncpa [#allocation4], 0 }
   0x3   :  { %11 = vsyncpa [#allocation4 + $0x1], 0 }
   0x4   :  { %12 = vsyncpa [#allocation5], 0 }
   0x5   :  { %14 = vsyncpa [#allocation5 + $0x1], 0  ;;  %s1031_s14 = smov 0   ;;  %s1033_s15 = smov 0  }
   0x6   :  { %s1035_s16 = smov 0   ;;  %s1037_s17 = smov 0  }
   0x7   :  { %s1039_s18 = smov 0   ;;  %s1041_s19 = smov 0  }
   0x8 LB: > { %s812_s0 = sadd.s32 4294967295, %s1002_s19   ;;  %s813_s20 = sadd.s32 4294967294, %s1002_s19   ;;  %s1002_s19 = sphi %s1041_s19, %s20_s19   ;;  %s998_s18 = sphi %s1039_s18, %s1184_s18   ;;  %s994_s17 = sphi %s1037_s17, %s1183_s17   ;;  %s990_s16 = sphi %s1035_s16, %s1182_s16   ;;  %s986_s15 = sphi %s1033_s15, %s1181_s15   ;;  %s982_s14 = sphi %s1031_s14, %s1180_s14  }
   0x9   : > { %s32_s21 = sadd.s32 1, %s998_s18  ;;  %s83_s22 = sadd.s32 1, %s990_s16 }
   0xa   : > { %p34_p0 = scmp.ge.s32.totalorder %s32_s21, 2  ;;  %p90_p1 = scmp.ne.s32.totalorder %s990_s16, %s986_s15 }
   0xb   : > { %p91_p2 = scmp.eq.s32.totalorder %s1002_s19, 0  ;;  %p96_p3 = scmp.ne.s32.totalorder %s986_s15, %s982_s14 }
   0xc   : > { %s1186_s21 = smov (%p34_p0, %s32_s21), 0  ;;  %p97_p5 = scmp.eq.s32.totalorder %s812_s0, 0 }
   0xd   : > { %p1072_p4 = por %p91_p2, %p90_p1  ;;  %s78_s24 = ssub.s32 %s998_s18, %s1186_s21 }
   0xe   : > { %p122_p6 = scmp.eq.s32.totalorder %s812_s0, 1  ;;  %p81_p7 = scmp.eq.s32.totalorder %s78_s24, 0 }
   0xf   : > { %p1078_p8 = por %p97_p5, %p96_p3  ;;  %p128_p10 = scmp.eq.s32.totalorder %s813_s20, 1 }
  0x10   : > { %p1082_p9 = por %p122_p6, %p90_p1  ;;  %p841_p13 = scmp.lt.s32.totalorder %s1002_s19, 2 }
  0x11   : > { %s1087_s27 = scalar_select %p81_p7, %s990_s16, %s83_s22  }
  0x12   : > { %p1089_p11 = por %p128_p10, %p96_p3  ;;  %s154_s29 = sand.u32 1, %s990_s16  }
  0x13   : > { %s816_s30 = sshll.u32 %s154_s29, 3  ;;  %s827_s4 = sshll.u32 %s998_s18, 7 }
  0x14   : > { %s1176_s28 = scalar_select %p1089_p11, 1, 0 }
  0x15   : > { %s166_s7 = scalar_lea.hbm %s1171_s2, %s827_s4  ;;  %s158_s8 = scalar_lea.vmem [#allocation3], %s816_s30 }
  0x16   : > { %s168_s9 = sshll.u32 %s158_s8, 4  ;;  %p1102_p0 = pnand %p841_p13, %p1072_p4  ;;  %s169_s9 = int_to_ptr.vmem [resolvable:$true] %s168_s9 }
  0x17   : > { %p819_p1 = scmp.ge.s32.totalorder %s1002_s19, 1  ;;  %p173_p2 = scmp.lt.s32.totalorder %s1002_s19, 3 }
  0x18   : > { %s155_s11 = scalar_lea.sflag [#allocation4], %s154_s29  ;;  %p896_p3 = pneg %p1102_p0 }
  0x19   : > { %s907_s12 = scalar_lea.vmem %s169_s9, 128  ;;  %s1004_s13 = smov [#allocation3]  }
  0x1a   : > { %p908_p5 = scmp.ne.s32.totalorder %s169_s9, %s907_s12  ;;  %s912_s0 = sshll.u32 %s1004_s13, 4  ;;  %s913_s0 = int_to_ptr.vmem [resolvable:$false] %s912_s0 }
  0x1b   : > { %s914_s20 = scalar_lea.vmem %s913_s0, 256  ;;  %p915_p10 = scmp.lt.s32.totalorder %s169_s9, %s913_s0 }
  0x1c   : > { %p910_p6 = pnand %p908_p5, %p896_p3  ;;  %p916_p12 = scmp.lt.s32.totalorder %s914_s20, %s907_s12 }
  0x1e   : > { %p911_p7 = pneg %p910_p6  ;;  %p917_p4 = por %p916_p12, %p915_p10 }
  0x20   : > { %p918_p13 = pnand %p917_p4, %p911_p7 }
  0x22   : > { %921 = shalt.err (!%p918_p13)
}
  0x23   : > { %836 = dma.hbm_to_vmem [thread:$0]  (!%p1102_p0), %s166_s7, 128, %s169_s9, %s155_s11  }
  0x24   : > { %p174_p11 = pnand %p819_p1, %p173_p2 }
  0x25   : > { %s1117_s22 = sand.u32 (!%p174_p11), 1, %s986_s15  }
  0x26   : > { %177 = sbr.rel (%p174_p11) target bundleno = 285 (0x11d), region = 32  ;;  %s820_s23 = sshll.u32 (!%p174_p11), %s1117_s22, 3 }
  0x27   : > { %s180_s24 = scalar_lea.sflag (!%p174_p11), [#allocation4], %s1117_s22  ;;  %s183_s29 = scalar_lea.vmem (!%p174_p11), [#allocation3], %s820_s23 }
  0x2b   : > { %973 = dma.done.wait (%p1078_p8), %s180_s24, 128  }
  0x2c   : > { %975 = vsyncadd (%p1078_p8), %s180_s24, 4294967168  ;;  %v1005_v0 = vmov 0.0   ;;  %vm218_vm0 = vcmask 1043456   ;;  %vm214_vm1 = vcmask 31744   ;;  %v209_v1 = vld [vmem:[%s183_s29] sm:$0xff]  ;;  %s210_s25 = sld [smem:[#allocation2]]  ;;  %v694_v36 = vlaneseq }
  0x2d   : > { %289 = vmatprep.mubr.f32.mxu0 %v1005_v0  ;;  %375 = vmatprep.mubr.f32.mxu1 %v1005_v0  ;;  %v208_v2 = vld [vmem:[%s1170_s1] sm:$0x1]  ;;  %v213_v3 = vcombine.high %v209_v1, %v209_v1  ;;  %v219_v4 = vsel %vm218_vm0, %v209_v1, 0  ;;  %v1006_v34 = vmov 1966171168   ;;  %s821_s5 = sshll.u32 %s1117_s22, 1 }
  0x2e   : > { %v216_v5 = vsel %vm214_vm1, %v208_v2, 0  ;;  %v255_v6 = vand.u32 4294901760, %v219_v4  ;;  %v692_v35 = vunpack.c.l.s4 %v1006_v34  ;;  %v695_v45 = vshrl.u32 %v694_v36, 7  ;;  %s828_s6 = sshll.u32 %s994_s17, 5  ;;  %s205_s7 = scalar_lea.vmem [#allocation6], %s821_s5 }
  0x2f   : > { %v290_v7 = vand.u32 4294901760, %v216_v5  ;;  %v221_v8 = vsel %vm218_vm0, %v213_v3, 0  ;;  %s728_s8 = sshll.u32 %s205_s7, 4  ;;  %vm708_vm2 = vcmp.lt.s32.totalorder %v694_v36, 256  ;;  %s726_s11 = scalar_lea.hbm %s1172_s3, %s828_s6  ;;  %s729_s8 = int_to_ptr.vmem [resolvable:$true] %s728_s8 }
  0x30   : > { %v253_v9 = vand.u32 4294901760, %v221_v8  ;;  %v338_v11 = vsub.f32 %v219_v4, %v255_v6  ;;  %v693_v44 = vunpack.c.0.s8 %v692_v35  ;;  %s712_s12 = scalar_lea.sflag [#allocation5], %s1117_s22  ;;  %s922_s13 = scalar_lea.vmem %s729_s8, 32 }
  0x31   : > { %v291_v10 = vsub.f32 %v216_v5, %v290_v7  ;;  %p923_p8 = scmp.ne.s32.totalorder %s729_s8, %s922_s13  ;;  %s1007_s0 = smov [#allocation6]  }
  0x32   : > { %254 = vmatprep.subr.mxu0 %v253_v9  ;;  %v332_v13 = vsub.f32 %v221_v8, %v253_v9  ;;  %v339_v14 = vand.u32 4294901760, %v338_v11  ;;  %v211_v22 = vstv %s210_s25  ;;  %v696_v52 = vsub.s32 %v693_v44, %v695_v45  ;;  %s926_s20 = sshll.u32 %s1007_s0, 4  ;;  %s927_s20 = int_to_ptr.vmem [resolvable:$false] %s926_s20 }
  0x33   : > { %v292_v12 = vand.u32 4294901760, %v291_v10  ;;  %256 = vmatpush1.msra.mxu0 %v255_v6  ;;  %p924_p11 = pnand %p923_p8, %p1082_p9  ;;  %s928_s17 = scalar_lea.vmem %s927_s20, 64 }
  0x34   : > { %v333_v16 = vand.u32 4294901760, %v332_v13  ;;  %415 = vmatprep.subr.mxu0 %v332_v13  ;;  %v340_v17 = vsub.f32 %v338_v11, %v339_v14  ;;  %p929_p0 = scmp.lt.s32.totalorder %s729_s8, %s927_s20  ;;  %p930_p1 = scmp.lt.s32.totalorder %s928_s17, %s922_s13 }
  0x35   : > { %v293_v15 = vsub.f32 %v291_v10, %v292_v12  ;;  %p925_p12 = pneg %p924_p11 }
  0x36   : > { %v334_v19 = vsub.f32 %v332_v13, %v333_v16  ;;  %v341_v20 = vand.u32 4294901760, %v340_v17  ;;  %p931_p2 = por %p930_p1, %p929_p0 }
  0x37   : > { %v294_v18 = vand.u32 4294901760, %v293_v15 }
  0x38   : > { %v335_v21 = vand.u32 4294901760, %v334_v19  ;;  %p932_p3 = pnand %p931_p2, %p925_p12 }
  0x39   : > { %295 = vmatmul.mubr.f32.vlgmr.msra.gmra.mxu0 %v294_v18 }
  0x3a   : > { %418 = vmatpush1.msra.mxu0 %v338_v11  ;;  %451 = vmatprep.mubr.f32.mxu0 %v1005_v0 }
  0x3b   : > { %336 = vmatprep.subr.mxu1 %v335_v21  ;;  %569 = vmatprep.subr.mxu0 %v333_v16 }
  0x3c   : > { %342 = vmatpush1.msra.mxu1 %v341_v20 }
  0x3d   : > { %377 = vmatmul.mubr.f32.vlgmr.msra.gmra.mxu1 %v290_v7  ;;  %491 = vmatprep.subr.mxu1 %v253_v9 }
  0x3e   : > { %454 = vmatmul.mubr.f32.vlgmr.msra.gmra.mxu0 %v291_v10  ;;  %493 = vmatpush1.msra.mxu1 %v255_v6 }
  0x3f   : > { %526 = vmatprep.mubr.f32.mxu1 %v1005_v0  ;;  %573 = vmatpush1.msra.mxu0 %v339_v14 }
  0x40   : > { %606 = vmatprep.mubr.f32.mxu0 %v1005_v0  ;;  %645 = vmatprep.subr.mxu1 %v253_v9 }
  0x41   : > { %530 = vmatmul.mubr.f32.vlgmr.msra.gmra.mxu1 %v292_v12 }
  0x42   : > { %608 = vmatmul.mubr.f32.vlgmr.msra.gmra.mxu0 %v290_v7  ;;  %647 = vmatpush1.msra.mxu1 %v255_v6 }
  0x43   : > { %680 = vmatprep.mubr.f32.mxu1 %v1005_v0 }
  0x45   : > { %682 = vmatmul.mubr.f32.vlgmr.msra.gmra.mxu1 %v290_v7 }
  0xf9   : > { %v296_v23 = vpop.f32.mrf.mxu0 }
  0xfa   : > { %v297_v24 = vadd.f32 %v296_v23, %v211_v22 }
  0xfb   : > { %v298_v25 = vpop.f32.mrf.mxu0 }
  0xfc   : > { %v299_v27 = vadd.f32 %v298_v25, %v211_v22 }
  0xfd   : > { %v378_v26 = vpop.f32.mrf.mxu1 }
  0xfe   : > { %v379_v28 = vadd.f32 %v378_v26, %v297_v24  ;;  %v455_v29 = vpop.f32.mrf.mxu0 }
  0xff   : > { %v380_v30 = vpop.f32.mrf.mxu1 }
 0x100   : > { %v456_v31 = vadd.f32 %v455_v29, %v379_v28  ;;  %v381_v32 = vadd.f32 %v380_v30, %v299_v27  ;;  %v457_v33 = vpop.f32.mrf.mxu0 }
 0x101   : > { %v531_v37 = vpop.f32.mrf.mxu1 }
 0x102   : > { %v458_v38 = vadd.f32 %v457_v33, %v381_v32  ;;  %v532_v39 = vadd.f32 %v531_v37, %v456_v31  ;;  %v609_v40 = vpop.f32.mrf.mxu0 }
 0x103   : > { %v533_v41 = vpop.f32.mrf.mxu1 }
 0x104   : > { %v610_v42 = vadd.f32 %v609_v40, %v532_v39  ;;  %v534_v43 = vadd.f32 %v533_v41, %v458_v38  ;;  %v611_v46 = vpop.f32.mrf.mxu0 }
 0x105   : > { %v683_v47 = vpop.f32.mrf.mxu1 }
 0x106   : > { %v612_v48 = vadd.f32 %v611_v46, %v534_v43  ;;  %v684_v50 = vadd.f32 %v683_v47, %v610_v42 }
 0x107   : > { %v685_v49 = vpop.f32.mrf.mxu1 }
 0x108   : > { %v686_v51 = vadd.f32 %v685_v49, %v612_v48 }
 0x10a   : > { %v690_v53 = vcombine.low %v684_v50, %v686_v51 }
 0x10c   : > { %v697_v54 = vrot.slane %v690_v53, %v696_v52 }
 0x10e   : > { %v704_v55 = vrot.slane %v697_v54, %v696_v52 }
 0x110   : > { %710 = vst.msk [vmem:[%s205_s7] sm:$0x3] %vm708_vm2, %v704_v55 }
 0x111   : > { %935 = shalt.err (!%p932_p3)
}
 0x112   : > { %s936_s23 = scalar_lea.hbm %s726_s11, 32  ;;  %s940_s29 = scalar_lea.hbm %s1172_s3, 64 }
 0x113   : > { %p937_p5 = scmp.ne.s32.totalorder %s726_s11, %s936_s23  ;;  %p941_p10 = scmp.lt.s32.totalorder %s726_s11, %s1172_s3 }
 0x114   : > { %p942_p4 = scmp.lt.s32.totalorder %s940_s29, %s936_s23 }
 0x115   : > { %p938_p6 = pnand %p937_p5, %p1082_p9 }
 0x116   : > { %p943_p13 = por %p942_p4, %p941_p10 }
 0x117   : > { %p939_p7 = pneg %p938_p6 }
 0x119   : > { %p944_p8 = pnand %p943_p13, %p939_p7 }
 0x11b   : > { %947 = shalt.err (!%p944_p8)
}
 0x11c   : > { %831 = dma.vmem_to_hbm [thread:$0]  (%p1082_p9), %s729_s8, 32, %s726_s11, %s712_s12  }
 0x11d PF: > { %s740_s25 = sand.u32 1, %s982_s14   ;;  %p1178_p11 = scmp.ne.s32.totalorder %s1176_s28, 0 }
 0x11e   : > { %p1179_p12 = scmp.ge.s32.totalorder %s1002_s19, 2  ;;  %s741_s5 = scalar_lea.sflag [#allocation5], %s740_s25 }
 0x120   : > { %p838_p0 = pnand %p1179_p12, %p1178_p11 }
 0x122   : > { %p839_p1 = pneg %p838_p0 }
 0x124   : > { %977 = dma.done.wait (%p839_p1), %s741_s5, 32  }
 0x125   : > { %979 = vsyncadd (%p839_p1), %s741_s5, 4294967264  ;;  %s20_s19 = sadd.s32 1, %s1002_s19   ;;  %s1180_s14 = smov %s986_s15 }
 0x126   : > { %p17_p2 = scmp.ge.s32.totalorder %s20_s19, 4   ;;  %s1181_s15 = smov %s990_s16 }
 0x127   : > { %s1182_s16 = smov %s1087_s27  ;;  %s1183_s17 = smov %s998_s18 }
 0x128   : > { %s1184_s18 = smov %s1186_s21  ;;  %19 = sbr.rel (!%p17_p2) target bundleno = 8 (0x8), region = 77 }
 0x12d   :  { %746 = vsyncpa [#allocation4], 1 }
 0x12e   :  { %748 = vsyncpa [#allocation4 + $0x1], 1 }
 0x12f   :  { %749 = vsyncpa [#allocation5], 1 }
 0x130   :  { %751 = vsyncpa [#allocation5 + $0x1], 1 }

</bundles_post_ra>
